<compile_context>
chip_gen: v7x
topology: tpu7x:2x2x1
jax: 0.10.0
libtpu: 0.0.40
codegen_flags: <defaults>
</compile_context>

<pallas_src>
import functools

import jax
import jax.numpy as jnp
from jax.experimental import pallas as pl
from jax.experimental.pallas import tpu as pltpu

_LANES = 128
_REG = 128                       # per-parameter region height in the packed slab
_O_W1, _O_W2, _O_W3, _O_B = 0, _REG, 2 * _REG, 3 * _REG
_SLAB_ROWS = 4 * _REG            # 512 rows x 128 lanes x f32 = 256 KiB, one DMA


def _round_up(x, m):
    return ((x + m - 1) // m) * m


# ---------------------------------------------------------------------------
# Host-side packing: call ONCE per weight update and cache the slab.
# ---------------------------------------------------------------------------
def pack_params(w1, b1, w2, b2, w3, b3):
    """Pack the 6 (in,out)-layout tensors into one (512, 128) f32 slab.

    Layout (all regions zero-padded to 128x128):
      rows [  0,128): W1^T (H, S) at [0:H, 0:S]
      rows [128,256): W2^T (H, H) at [0:H, 0:H]
      rows [256,384): W3^T (A, H) at [0:A, 0:H]
      rows [384,512): bias columns: lane0 = b1 (H), lane1 = b2 (H), lane2 = b3 (A)
    """
    S, H = w1.shape
    H2, A = w3.shape
    assert H2 == H and max(S, H, A) <= _REG and A <= _LANES
    buf = jnp.zeros((_SLAB_ROWS, _LANES), jnp.float32)
    buf = buf.at[_O_W1:_O_W1 + H, 0:S].set(jnp.asarray(w1, jnp.float32).T)
    buf = buf.at[_O_W2:_O_W2 + H, 0:H].set(jnp.asarray(w2, jnp.float32).T)
    buf = buf.at[_O_W3:_O_W3 + A, 0:H].set(jnp.asarray(w3, jnp.float32).T)
    buf = buf.at[_O_B:_O_B + H, 0].set(jnp.asarray(b1, jnp.float32).reshape(-1))
    buf = buf.at[_O_B:_O_B + H, 1].set(jnp.asarray(b2, jnp.float32).reshape(-1))
    buf = buf.at[_O_B:_O_B + A, 2].set(jnp.asarray(b3, jnp.float32).reshape(-1))
    return buf


# ---------------------------------------------------------------------------
# Fused MLP + categorical-sample Pallas kernel (batch on the lane axis)
# ---------------------------------------------------------------------------
def _actor_kernel(x_ref, u_ref, p_ref, act_ref, *maybe_logits,
                  state_dim, action_dim, return_logits):
    S, A = state_dim, action_dim
    xt = x_ref[...]                                       # (S, TB), batch on lanes

    w1t = p_ref[_O_W1:_O_W1 + _REG, 0:S]                  # (128, S)
    w2t = p_ref[_O_W2:_O_W2 + _REG, :]                    # (128, 128)
    w3t = p_ref[_O_W3:_O_W3 + _REG, :]                    # (128, 128)
    b1 = p_ref[_O_B:_O_B + _REG, 0:1]                     # (128, 1) bias columns
    b2 = p_ref[_O_B:_O_B + _REG, 1:2]
    b3 = p_ref[_O_B:_O_B + _REG, 2:3]

    h1 = jnp.maximum(
        jnp.dot(w1t, xt, preferred_element_type=jnp.float32) + b1, 0.0)
    h2 = jnp.maximum(
        jnp.dot(w2t, h1, preferred_element_type=jnp.float32) + b2, 0.0)
    y = jnp.dot(w3t, h2, preferred_element_type=jnp.float32) + b3   # (128, TB)
    # Rows >= A of y are exactly 0 (zero-padded slab); only rows [0, A) are logits.

    u = u_ref[...]                                        # (A_u, TB) uniforms
    if A == 2:
        # P(action=1 | row) = softmax(y)[1] = sigmoid(y1 - y0): one Bernoulli
        # compare per column -> no cross-sublane reduction, one exp per column.
        d = y[1:2, :] - y[0:1, :]                         # (1, TB)
        p_one = 1.0 / (1.0 + jnp.exp(-d))
        act = (u[0:1, :] < p_one).astype(jnp.int32)       # (1, TB)
    else:
        # Gumbel-max over the A real logit rows == per-row multinomial.
        ya = y[0:A, :]
        g = -jnp.log(-jnp.log(jnp.maximum(u, 1e-12)))
        z = ya + g
        zmax = jnp.max(z, axis=0, keepdims=True)
        idx = jax.lax.broadcasted_iota(jnp.int32, z.shape, 0)
        picked = jnp.where(z >= zmax, idx, A)             # ties -> min index
        act = jnp.min(picked, axis=0, keepdims=True).astype(jnp.int32)

    act_ref[...] = act                                    # lane-dense (1, TB) store
    if return_logits:
        maybe_logits[0][...] = y[0:A, :]                  # (A, TB)


def _choose_tile(B, block_b):
    if B <= 256:
        return B                  # single grid step; block == full array
    # >= 2 "parallel" steps so both v7x TensorCores get work; tiles are
    # 128-lane aligned and capped at block_b to amortize per-step overhead.
    return min(_round_up(block_b, 128), _round_up(pl.cdiv(B, 2), 128))


def actor_forward(x, packed, uniforms, *, state_dim, hidden, action_dim,
                  return_logits=False, block_b=2048):
    """Fused actor forward.  x: (B, S). Returns actions (B,1) int32 [, logits (B,A)]."""
    B, S = x.shape
    assert S == state_dim
    A = action_dim
    A_u = 1 if A == 2 else A
    assert uniforms.shape == (A_u, B)
    assert packed.shape == (_SLAB_ROWS, _LANES)

    xt = jnp.transpose(x)         # (S, B): batch on lanes. Callers in a tight RL
                                  # loop can build the batch pre-transposed.
    TB = _choose_tile(B, block_b)
    grid = (pl.cdiv(B, TB),)

    kernel = functools.partial(_actor_kernel, state_dim=S, action_dim=A,
                               return_logits=return_logits)

    in_specs = [
        pl.BlockSpec((S, TB), lambda i: (0, i)),               # x tile (lane dense)
        pl.BlockSpec((A_u, TB), lambda i: (0, i)),             # uniforms tile
        pl.BlockSpec((_SLAB_ROWS, _LANES), lambda i: (0, 0)),  # whole param slab
    ]
    out_specs = [pl.BlockSpec((1, TB), lambda i: (0, i))]      # actions row
    out_shape = [jax.ShapeDtypeStruct((1, B), jnp.int32)]
    if return_logits:
        out_specs.append(pl.BlockSpec((A, TB), lambda i: (0, i)))
        out_shape.append(jax.ShapeDtypeStruct((A, B), jnp.float32))

    outs = pl.pallas_call(
        kernel,
        grid=grid,
        in_specs=in_specs,
        out_specs=out_specs,
        out_shape=out_shape,
        compiler_params=pltpu.CompilerParams(
            dimension_semantics=("parallel",)),
    )(xt, uniforms, packed)

    actions = outs[0].reshape(B, 1)
    if return_logits:
        return actions, jnp.transpose(outs[1])
    return actions


def sample_uniforms(key, batch, action_dim):
    a_u = 1 if action_dim == 2 else action_dim
    return jax.random.uniform(key, (a_u, batch), jnp.float32)


def actor_network_forward(x, packed, key, *, state_dim, hidden=24, action_dim=2):
    """Mirrors ActorNetwork.forward: returns sampled actions (B, 1) int32.

    `packed` is the cached pack_params(...) slab (repack only when the CEM
    weights change); pass a FRESH jax PRNG key every env step.
    """
    uniforms = sample_uniforms(key, x.shape[0], action_dim)
    return actor_forward(x, packed, uniforms, state_dim=state_dim,
                         hidden=hidden, action_dim=action_dim,
                         return_logits=False)


def init_params(key, state_dim, action_dim, hidden=24):
    """Synthetic weights with mean=0, std=1 — matches init_weight()."""
    ks = jax.random.split(key, 6)
    w1 = jax.random.normal(ks[0], (state_dim, hidden), jnp.float32)
    b1 = jax.random.normal(ks[1], (1, hidden), jnp.float32)
    w2 = jax.random.normal(ks[2], (hidden, hidden), jnp.float32)
    b2 = jax.random.normal(ks[3], (1, hidden), jnp.float32)
    w3 = jax.random.normal(ks[4], (hidden, action_dim), jnp.float32)
    b3 = jax.random.normal(ks[5], (1, action_dim), jnp.float32)
    return (w1, b1, w2, b2, w3, b3)


if __name__ == "__main__":
    state_dim, action_dim, hidden, batch = 4, 2, 24, 8   # CartPole-like dims
    key = jax.random.PRNGKey(0)
    k_param, k_x, k_u, k_x2, k_u2 = jax.random.split(key, 5)

    params = init_params(k_param, state_dim, action_dim, hidden)
    packed = pack_params(*params)          # packed ONCE, reused by every call

    # --- small CartPole-sized batch (single grid step) ----------------------
    x = jax.random.normal(k_x, (batch, state_dim), jnp.float32)
    uniforms = sample_uniforms(k_u, batch, action_dim)
    actions, logits = actor_forward(x, packed, uniforms, state_dim=state_dim,
                                    hidden=hidden, action_dim=action_dim,
                                    return_logits=True)
    actions = jax.block_until_ready(actions)
    logits = jax.block_until_ready(logits)

    # Pure-JAX reference (the global shift/exp/renorm cancel inside the
    # per-row multinomial, so the logits fully determine the distribution).
    w1, b1, w2, b2, w3, b3 = params
    r = jnp.maximum(x @ w1 + b1, 0.0)
    r = jnp.maximum(r @ w2 + b2, 0.0)
    ref_logits = r @ w3 + b3
    p_one = jax.nn.sigmoid(ref_logits[:, 1] - ref_logits[:, 0])
    ref_act = (uniforms[0, :] < p_one).astype(jnp.int32)

    assert logits.shape == (batch, action_dim)
    assert bool(jnp.isfinite(logits).all())
    err = float(jnp.max(jnp.abs(logits - ref_logits)))
    scale = float(jnp.max(jnp.abs(ref_logits))) + 1.0
    assert err < 5e-2 * scale, f"logit mismatch: max abs err {err}"

    assert actions.shape == (batch, 1)
    assert actions.dtype == jnp.int32
    assert bool(jnp.all((actions >= 0) & (actions < action_dim)))
    # Sampling is deterministic given the uniforms: must match the reference
    # draw except on measure-zero threshold ties.
    margin = jnp.abs(p_one - uniforms[0, :])
    same = (actions.reshape(-1) == ref_act) | (margin < 1e-4)
    assert bool(jnp.all(same)), "sampled actions disagree with reference draw"

    # --- larger CEM-style batch exercising the tiled "parallel" grid path ---
    big_b = 512
    xb = jax.random.normal(k_x2, (big_b, state_dim), jnp.float32)
    acts_big = actor_network_forward(xb, packed, k_u2, state_dim=state_dim,
                                     hidden=hidden, action_dim=action_dim)
    acts_big = jax.block_until_ready(acts_big)
    assert acts_big.shape == (big_b, 1) and acts_big.dtype == jnp.int32
    assert bool(jnp.all((acts_big >= 0) & (acts_big < action_dim)))

    print("KERNEL_OK")
</pallas_src>

<mosaic_0001>
module attributes {stable_mosaic.version = 11 : i64} {
  func.func @_actor_kernel(%arg0: i32, %arg1: memref<4x8xf32, #tpu.memory_space<vmem>>, %arg2: memref<1x8xf32, #tpu.memory_space<vmem>>, %arg3: memref<512x128xf32, #tpu.memory_space<vmem>>, %arg4: memref<1x8xi32, #tpu.memory_space<vmem>>, %arg5: memref<2x8xf32, #tpu.memory_space<vmem>>) attributes {dimension_semantics = [#tpu.dimension_semantics<parallel>], iteration_bounds = array<i64: 1>, scalar_prefetch = 0 : i64, scratch_operands = 0 : i64, tpu.core_type = #tpu.core_type<tc>, window_params = [{transform_indices = @transform_0, window_bounds = array<i64: 4, 8>}, {transform_indices = @transform_1, window_bounds = array<i64: 1, 8>}, {pipeline_mode = #tpu.pipeline_mode<synchronous>, transform_indices = @transform_2, window_bounds = array<i64: 512, 128>}, {transform_indices = @transform_3, window_bounds = array<i64: 1, 8>}, {transform_indices = @transform_4, window_bounds = array<i64: 2, 8>}]} {
    %c0 = arith.constant 0 : index
    %c0_0 = arith.constant 0 : index
    %0 = vector.load %arg1[%c0, %c0_0] : memref<4x8xf32, #tpu.memory_space<vmem>>, vector<4x8xf32>
    %c0_1 = arith.constant 0 : index
    %c0_2 = arith.constant 0 : index
    %1 = vector.load %arg3[%c0_1, %c0_2] : memref<512x128xf32, #tpu.memory_space<vmem>>, vector<128x4xf32>
    %c128 = arith.constant 128 : index
    %c0_3 = arith.constant 0 : index
    %2 = vector.load %arg3[%c128, %c0_3] : memref<512x128xf32, #tpu.memory_space<vmem>>, vector<128x128xf32>
    %c256 = arith.constant 256 : index
    %c0_4 = arith.constant 0 : index
    %3 = vector.load %arg3[%c256, %c0_4] : memref<512x128xf32, #tpu.memory_space<vmem>>, vector<128x128xf32>
    %c384 = arith.constant 384 : index
    %c0_5 = arith.constant 0 : index
    %4 = vector.load %arg3[%c384, %c0_5] : memref<512x128xf32, #tpu.memory_space<vmem>>, vector<128x1xf32>
    %c384_6 = arith.constant 384 : index
    %c1 = arith.constant 1 : index
    %5 = vector.load %arg3[%c384_6, %c1] : memref<512x128xf32, #tpu.memory_space<vmem>>, vector<128x1xf32>
    %c384_7 = arith.constant 384 : index
    %c2 = arith.constant 2 : index
    %6 = vector.load %arg3[%c384_7, %c2] : memref<512x128xf32, #tpu.memory_space<vmem>>, vector<128x1xf32>
    %cst = arith.constant dense<0.000000e+00> : vector<128x8xf32>
    %7 = tpu.matmul %1, %0, %cst {dimension_numbers = #tpu.dot_dimension_numbers<[1], [0], [0], [1], [0, 0, 1, 1], [], []>} : vector<128x4xf32>, vector<4x8xf32>, vector<128x8xf32> -> vector<128x8xf32>
    %8 = vector.broadcast %4 : vector<128x1xf32> to vector<128x8xf32>
    %9 = arith.addf %7, %8 : vector<128x8xf32>
    %cst_8 = arith.constant 0.000000e+00 : f32
    %10 = vector.broadcast %cst_8 : f32 to vector<128x8xf32>
    %11 = arith.maximumf %9, %10 : vector<128x8xf32>
    %cst_9 = arith.constant dense<0.000000e+00> : vector<128x8xf32>
    %12 = tpu.matmul %2, %11, %cst_9 {dimension_numbers = #tpu.dot_dimension_numbers<[1], [0], [0], [1], [0, 0, 1, 1], [], []>} : vector<128x128xf32>, vector<128x8xf32>, vector<128x8xf32> -> vector<128x8xf32>
    %13 = vector.broadcast %5 : vector<128x1xf32> to vector<128x8xf32>
    %14 = arith.addf %12, %13 : vector<128x8xf32>
    %cst_10 = arith.constant 0.000000e+00 : f32
    %15 = vector.broadcast %cst_10 : f32 to vector<128x8xf32>
    %16 = arith.maximumf %14, %15 : vector<128x8xf32>
    %cst_11 = arith.constant dense<0.000000e+00> : vector<128x8xf32>
    %17 = tpu.matmul %3, %16, %cst_11 {dimension_numbers = #tpu.dot_dimension_numbers<[1], [0], [0], [1], [0, 0, 1, 1], [], []>} : vector<128x128xf32>, vector<128x8xf32>, vector<128x8xf32> -> vector<128x8xf32>
    %18 = vector.broadcast %6 : vector<128x1xf32> to vector<128x8xf32>
    %19 = arith.addf %17, %18 : vector<128x8xf32>
    %c0_12 = arith.constant 0 : index
    %c0_13 = arith.constant 0 : index
    %20 = vector.load %arg2[%c0_12, %c0_13] : memref<1x8xf32, #tpu.memory_space<vmem>>, vector<1x8xf32>
    %21 = vector.extract_strided_slice %19 {offsets = [1, 0], sizes = [1, 8], strides = [1, 1]} : vector<128x8xf32> to vector<1x8xf32>
    %22 = vector.extract_strided_slice %19 {offsets = [0, 0], sizes = [1, 8], strides = [1, 1]} : vector<128x8xf32> to vector<1x8xf32>
    %23 = arith.subf %21, %22 : vector<1x8xf32>
    %cst_14 = arith.constant 0.000000e+00 : f32
    %24 = vector.broadcast %cst_14 : f32 to vector<1x8xf32>
    %25 = arith.subf %24, %23 : vector<1x8xf32>
    %26 = math.exp %25 : vector<1x8xf32>
    %cst_15 = arith.constant 1.000000e+00 : f32
    %27 = vector.broadcast %cst_15 : f32 to vector<1x8xf32>
    %28 = arith.addf %27, %26 : vector<1x8xf32>
    %cst_16 = arith.constant 1.000000e+00 : f32
    %29 = vector.broadcast %cst_16 : f32 to vector<1x8xf32>
    %30 = arith.divf %29, %28 : vector<1x8xf32>
    %31 = arith.cmpf olt, %20, %30 : vector<1x8xf32>
    %32 = arith.extui %31 : vector<1x8xi1> to vector<1x8xi32>
    %c0_17 = arith.constant 0 : index
    %c0_18 = arith.constant 0 : index
    %33 = vector.load %arg4[%c0_17, %c0_18] : memref<1x8xi32, #tpu.memory_space<vmem>>, vector<1x8xi32>
    tpu.vector_store %arg4[%c0_17, %c0_18], %32 {strides = array<i32>} : memref<1x8xi32, #tpu.memory_space<vmem>>, vector<1x8xi32>,
    %34 = vector.extract_strided_slice %19 {offsets = [0, 0], sizes = [2, 8], strides = [1, 1]} : vector<128x8xf32> to vector<2x8xf32>
    %c0_19 = arith.constant 0 : index
    %c0_20 = arith.constant 0 : index
    %35 = vector.load %arg5[%c0_19, %c0_20] : memref<2x8xf32, #tpu.memory_space<vmem>>, vector<2x8xf32>
    tpu.vector_store %arg5[%c0_19, %c0_20], %34 {strides = array<i32>} : memref<2x8xf32, #tpu.memory_space<vmem>>, vector<2x8xf32>,
    return
  }
  func.func @transform_0(%arg0: i32) -> (i32, i32) {
    %c0_i32 = arith.constant 0 : i32
    %c0_i32_0 = arith.constant 0 : i32
    return %c0_i32, %arg0 : i32, i32
  }
  func.func @transform_1(%arg0: i32) -> (i32, i32) {
    %c0_i32 = arith.constant 0 : i32
    %c0_i32_0 = arith.constant 0 : i32
    return %c0_i32, %arg0 : i32, i32
  }
  func.func @transform_2(%arg0: i32) -> (i32, i32) {
    %c0_i32 = arith.constant 0 : i32
    %c0_i32_0 = arith.constant 0 : i32
    %c0_i32_1 = arith.constant 0 : i32
    return %c0_i32, %c0_i32_0 : i32, i32
  }
  func.func @transform_3(%arg0: i32) -> (i32, i32) {
    %c0_i32 = arith.constant 0 : i32
    %c0_i32_0 = arith.constant 0 : i32
    return %c0_i32, %arg0 : i32, i32
  }
  func.func @transform_4(%arg0: i32) -> (i32, i32) {
    %c0_i32 = arith.constant 0 : i32
    %c0_i32_0 = arith.constant 0 : i32
    return %c0_i32, %arg0 : i32, i32
  }
}

</mosaic_0001>

<bundles_post_ra>
// kernel: tpu_custom_call.1
= control target key start
LH: loop header
LB: loop body
LE: loop exit
PB: predicated region body
PF: predicated region fallthrough
CT: control target
= control target key end

     0   :  { %10 = vsyncpa [#allocation3], 0  ;;  %s1404_s0 = inlined_call_operand.hbm [shape: f32[4,8], index: 0, kind: input, shape index: {}]   ;;  %s1405_s1 = inlined_call_operand.vmem [shape: f32[1,8], index: 1, kind: input, shape index: {}]   ;;  %s1406_s2 = inlined_call_operand.hbm [shape: f32[512,128], index: 2, kind: input, shape index: {}]   ;;  %s1407_s3 = inlined_call_operand.hbm [shape: s32[1,8], index: 3, kind: output, shape index: {0}]   ;;  %s1408_s4 = inlined_call_operand.hbm [shape: f32[2,8], index: 4, kind: output, shape index: {1}]  }
   0x1   :  { %11 = vsyncpa [#allocation6], 0 }
   0x2   :  { %12 = vsyncpa [#allocation4], 0 }
   0x3   :  { %13 = vsyncpa [#allocation9], 0  ;;  %s1287_s15 = smov [#allocation2]   ;;  %s1288_s17 = smov [#allocation5]  }
   0x4   :  { %s20_s16 = sshll.u32 %s1287_s15, 4  ;;  %s31_s18 = sshll.u32 %s1288_s17, 4  ;;  %s21_s16 = int_to_ptr.vmem [resolvable:$true] %s20_s16  ;;  %s1322_s18 = int_to_ptr.vmem [resolvable:$true] %s31_s18 }
   0x5   :  { %s1191_s21 = scalar_lea.hbm %s1404_s0, 64 }
   0x6   :  { %p1192_p0 = scmp.ne.s32.totalorder %s1404_s0, %s1191_s21  ;;  %p1195_p1 = scmp.lt.u32.totalorder %s1191_s21, %s1404_s0 }
   0x8   :  { %p1197_p2 = pnand %p1195_p1, %p1192_p0 }
   0xa   :  { %1200 = shalt.err (!%p1197_p2)
}
   0xb   :  { %s1201_s26 = scalar_lea.vmem %s21_s16, 64  ;;  %p1206_p4 = scmp.lt.s32.totalorder %s21_s16, %s21_s16 }
   0xc   :  { %p1202_p3 = scmp.ne.s32.totalorder %s21_s16, %s1201_s26  ;;  %p1207_p5 = scmp.lt.s32.totalorder %s1201_s26, %s1201_s26 }
   0xe   :  { %p1208_p6 = por %p1207_p5, %p1206_p4 }
  0x10   :  { %p1209_p7 = pnand %p1208_p6, %p1202_p3 }
  0x12   :  { %1212 = shalt.err (!%p1209_p7)
}
  0x13   :  { %23 = dma.hbm_to_vmem [thread:$0]  %s1404_s0, 64, %s21_s16, [#allocation3]  }
  0x14   :  { %s1213_s5 = scalar_lea.hbm %s1406_s2, 8192 }
  0x15   :  { %p1214_p8 = scmp.ne.s32.totalorder %s1406_s2, %s1213_s5  ;;  %p1217_p9 = scmp.lt.u32.totalorder %s1213_s5, %s1406_s2 }
  0x17   :  { %p1219_p10 = pnand %p1217_p9, %p1214_p8 }
  0x19   :  { %1222 = shalt.err (!%p1219_p10)
}
  0x1a   :  { %s1223_s10 = scalar_lea.vmem %s1322_s18, 8192  ;;  %p1228_p12 = scmp.lt.s32.totalorder %s1322_s18, %s1322_s18 }
  0x1b   :  { %p1224_p11 = scmp.ne.s32.totalorder %s1322_s18, %s1223_s10  ;;  %p1229_p13 = scmp.lt.s32.totalorder %s1223_s10, %s1223_s10 }
  0x1d   :  { %p1230_p0 = por %p1229_p13, %p1228_p12 }
  0x1f   :  { %p1231_p1 = pnand %p1230_p0, %p1224_p11 }
  0x21   :  { %1234 = shalt.err (!%p1231_p1)
}
  0x22   :  { %s1289_s0 = smov 128   ;;  %s1290_s11 = smov 8  }
  0x23   :  { %37 = dma.hbm_to_vmem [thread:$0]  %s1406_s2, 8192, %s1322_s18, [#allocation6], %s1289_s0, %s1289_s0, %s1290_s11  }
  0x24   :  { %1279 = dma.done.wait [#allocation3], 64  }
  0x25   :  { %1280 = vsyncadd [#allocation3], 4294967232 }
  0x26   :  { %1281 = dma.done.wait [#allocation6], 8192  }
  0x27   :  { %1282 = vsyncadd [#allocation6], 4294959104  ;;  %v1291_v0 = vmov 0   ;;  %vm238_vm0 = vcmask 1043456   ;;  %vm189_vm1 = vcmask 31744   ;;  %v45_v2 = vld [vmem:[#allocation5] sm:$0xff] }
  0x28   :  { %1181 = vset.pattern.permute.xlu0 %v1291_v0  ;;  %1182 = vset.pattern.permute.xlu1 %v1291_v0  ;;  %v44_v1 = vld [vmem:[#allocation2] sm:$0xf]  ;;  %v46_v3 = vld [vmem:[#allocation5 + $0x8] sm:$0xff]  ;;  %v47_v4 = vld [vmem:[#allocation5 + $0x10] sm:$0xff]  ;;  %v1292_v35 = vmov 1   ;;  %s1294_s2 = smov [#allocation8]  }
  0x29   :  { %969 = vmatprep.subr.msk.mxu0 %vm238_vm0, %v44_v1  ;;  %971 = vmatprep.mubr.msk.f32.mxu0 %vm189_vm1, %v45_v2  ;;  %v48_v5 = vld [vmem:[#allocation5 + $0x18] sm:$0xff]  ;;  %v49_v6 = vld [vmem:[#allocation5 + $0x20] sm:$0xff]  ;;  %v95_v8 = vld [vmem:[#allocation5 + $0x190] sm:$0xff]  ;;  %s857_s14 = sshll.u32 %s1294_s2, 4  ;;  %vm839_vm2 = vcmask 58368   ;;  %s858_s14 = int_to_ptr.vmem [resolvable:$true] %s857_s14 }
  0x2a   :  { %970 = vmatpush3.msk.msra.mxu0 %vm238_vm0, %v44_v1  ;;  %v1358_v7 = vld [vmem:[#allocation5 + $0x180] sm:$0xff]  ;;  %121 = vperm.xlu1 %1182, %v95_v8   ;;  %v94_v9 = vld [vmem:[#allocation5 + $0x188] sm:$0xff]  ;;  %v96_v11 = vld [vmem:[#allocation5 + $0x198] sm:$0xff]  ;;  %s1235_s15 = scalar_lea.vmem %s858_s14, 32  ;;  %p1240_p3 = scmp.lt.s32.totalorder %s858_s14, %s858_s14 }
  0x2b   :  { %972 = vmatmul.mubr.msk.f32.vlgmr.msra.gmra.mrb[0].mxu0 %vm189_vm1, %v46_v3  ;;  %111 = vperm.xlu0 %1181, %v1358_v7   ;;  %v50_v10 = vld [vmem:[#allocation5 + $0x28] sm:$0xff]  ;;  %v51_v12 = vld [vmem:[#allocation5 + $0x30] sm:$0xff]  ;;  %v97_v13 = vld [vmem:[#allocation5 + $0x1a0] sm:$0xff]  ;;  %p1236_p2 = scmp.ne.s32.totalorder %s858_s14, %s1235_s15  ;;  %p1241_p4 = scmp.lt.s32.totalorder %s1235_s15, %s1235_s15 }
  0x2c   :  { %974 = vmatprep.mubr.msk.f32.mxu0 %vm189_vm1, %v47_v4  ;;  %v52_v14 = vld [vmem:[#allocation5 + $0x38] sm:$0xff]  ;;  %v98_v15 = vld [vmem:[#allocation5 + $0x1a8] sm:$0xff]  ;;  %v53_v16 = vld [vmem:[#allocation5 + $0x40] sm:$0xff] }
  0x2d   :  { %v99_v17 = vld [vmem:[#allocation5 + $0x1b0] sm:$0xff]  ;;  %v54_v18 = vld [vmem:[#allocation5 + $0x48] sm:$0xff]  ;;  %v100_v19 = vld [vmem:[#allocation5 + $0x1b8] sm:$0xff]  ;;  %p1242_p5 = por %p1241_p4, %p1240_p3 }
  0x2e   :  { %126 = vperm.xlu1 %1182, %v96_v11   ;;  %v55_v20 = vld [vmem:[#allocation5 + $0x50] sm:$0xff]  ;;  %v101_v21 = vld [vmem:[#allocation5 + $0x1c0] sm:$0xff]  ;;  %v56_v22 = vld [vmem:[#allocation5 + $0x58] sm:$0xff] }
  0x2f   :  { %975 = vmatmul.mubr.msk.f32.gmra.mrb[2].mxu0 %vm189_vm1, %v48_v5  ;;  %116 = vperm.xlu0 %1181, %v94_v9   ;;  %v102_v23 = vld [vmem:[#allocation5 + $0x1c8] sm:$0xff]  ;;  %v57_v24 = vld [vmem:[#allocation5 + $0x60] sm:$0xff]  ;;  %v103_v25 = vld [vmem:[#allocation5 + $0x1d0] sm:$0xff]  ;;  %p1243_p6 = pnand %p1242_p5, %p1236_p2 }
  0x30   :  { %977 = vmatprep.mubr.msk.f32.mxu0 %vm189_vm1, %v49_v6  ;;  %v58_v26 = vld [vmem:[#allocation5 + $0x68] sm:$0xff]  ;;  %v104_v27 = vld [vmem:[#allocation5 + $0x1d8] sm:$0xff]  ;;  %v59_v28 = vld [vmem:[#allocation5 + $0x70] sm:$0xff] }
  0x31   :  { %v105_v29 = vld [vmem:[#allocation5 + $0x1e0] sm:$0xff]  ;;  %v60_v30 = vld [vmem:[#allocation5 + $0x78] sm:$0xff]  ;;  %v106_v31 = vld [vmem:[#allocation5 + $0x1e8] sm:$0xff] }
  0x32   :  { %136 = vperm.xlu1 %1182, %v98_v15   ;;  %v107_v32 = vld [vmem:[#allocation5 + $0x1f0] sm:$0xff]  ;;  %v108_v33 = vld [vmem:[#allocation5 + $0x1f8] sm:$0xff]  ;;  %v61_v34 = vld [vmem:[#allocation5 + $0x80] sm:$0xff] }
  0x33   :  { %978 = vmatmul.mubr.msk.f32.gmra.mrb[4].mxu0 %vm189_vm1, %v50_v10  ;;  %131 = vperm.xlu0 %1181, %v97_v13  }
  0x34   :  { %980 = vmatprep.mubr.msk.f32.mxu0 %vm189_vm1, %v51_v12  ;;  %1027 = vmatprep.mubr.f32.mxu1 %v61_v34 }
  0x36   :  { %146 = vperm.xlu1 %1182, %v100_v19  }
  0x37   :  { %981 = vmatmul.mubr.msk.f32.gmra.mrb[6].mxu0 %vm189_vm1, %v52_v14  ;;  %141 = vperm.xlu0 %1181, %v99_v17  }
  0x38   :  { %983 = vmatprep.mubr.msk.f32.mxu0 %vm189_vm1, %v53_v16 }
  0x3a   :  { %156 = vperm.xlu1 %1182, %v102_v23  }
  0x3b   :  { %984 = vmatmul.mubr.msk.f32.gmra.mrb[8].mxu0 %vm189_vm1, %v54_v18  ;;  %151 = vperm.xlu0 %1181, %v101_v21  }
  0x3c   :  { %986 = vmatprep.mubr.msk.f32.mxu0 %vm189_vm1, %v55_v20 }
  0x3e   :  { %166 = vperm.xlu1 %1182, %v104_v27  }
  0x3f   :  { %987 = vmatmul.mubr.msk.f32.gmra.mrb[10].mxu0 %vm189_vm1, %v56_v22  ;;  %161 = vperm.xlu0 %1181, %v103_v25  }
  0x40   :  { %989 = vmatprep.mubr.msk.f32.mxu0 %vm189_vm1, %v57_v24 }
  0x42   :  { %176 = vperm.xlu1 %1182, %v106_v31  }
  0x43   :  { %990 = vmatmul.mubr.msk.f32.gmra.mrb[12].mxu0 %vm189_vm1, %v58_v26  ;;  %171 = vperm.xlu0 %1181, %v105_v29  }
  0x44   :  { %992 = vmatprep.mubr.msk.f32.mxu0 %vm189_vm1, %v59_v28 }
  0x46   :  { %186 = vperm.xlu1 %1182, %v108_v33  }
  0x47   :  { %993 = vmatmul.mubr.msk.f32.gmra.mrb[14].mxu0 %vm189_vm1, %v60_v30  ;;  %181 = vperm.xlu0 %1181, %v107_v32  }
  0x4a   :  { %1184 = vset.pattern.permute.xlu1 %v1292_v35 }
  0x4b   :  { %1183 = vset.pattern.permute.xlu0 %v1292_v35  ;;  %408 = vperm.xlu1 %1184, %v94_v9  }
  0x4c   :  { %404 = vperm.xlu0 %1183, %v1358_v7  }
  0x4f   :  { %412 = vperm.xlu1 %1184, %v95_v8  }
  0x50   :  { %416 = vperm.xlu0 %1183, %v96_v11  }
  0x53   :  { %420 = vperm.xlu1 %1184, %v97_v13  }
  0x54   :  { %424 = vperm.xlu0 %1183, %v98_v15  }
  0x57   :  { %428 = vperm.xlu1 %1184, %v99_v17  }
  0x58   :  { %432 = vperm.xlu0 %1183, %v100_v19  }
  0x5b   :  { %436 = vperm.xlu1 %1184, %v101_v21  }
  0x5c   :  { %440 = vperm.xlu0 %1183, %v102_v23  }
  0x5f   :  { %444 = vperm.xlu1 %1184, %v103_v25  }
  0x60   :  { %448 = vperm.xlu0 %1183, %v104_v27  }
  0x63   :  { %452 = vperm.xlu1 %1184, %v105_v29  }
  0x64   :  { %456 = vperm.xlu0 %1183, %v106_v31  }
  0x67   :  { %460 = vperm.xlu1 %1184, %v107_v32  }
  0x68   :  { %464 = vperm.xlu0 %1183, %v108_v33  }
  0xa9   :  { %v122_v36 = vpop.permute.xlu1 %121 }
  0xaa   :  { %v112_v37 = vpop.permute.xlu0 %111 }
  0xad   :  { %v127_v38 = vpop.permute.xlu1 %126 }
  0xae   :  { %v117_v39 = vpop.permute.xlu0 %116 }
  0xb1   :  { %v137_v40 = vpop.permute.xlu1 %136 }
  0xb2   :  { %v132_v41 = vpop.permute.xlu0 %131 }
  0xb5   :  { %v147_v47 = vpop.permute.xlu1 %146 }
  0xb6   :  { %v142_v50 = vpop.permute.xlu0 %141 }
  0xb9   :  { %v157_v60 = vpop.permute.xlu1 %156 }
  0xba   :  { %v152_v63 = vpop.permute.xlu0 %151 }
  0xbd   :  { %v167_v10 = vpop.permute.xlu1 %166 }
  0xbe   :  { %v162_v13 = vpop.permute.xlu0 %161 }
  0xc1   :  { %v177_v23 = vpop.permute.xlu1 %176 }
  0xc2   :  { %v172_v26 = vpop.permute.xlu0 %171 }
  0xc5   :  { %v187_v35 = vpop.permute.xlu1 %186 }
  0xfe   :  { %v973_v42 = vpop.f32.mrb[0].mxu0 }
  0xff   :  { %v314_v43 = vadd.f32 %v973_v42, %v117_v39  ;;  %v308_v44 = vpop.f32.mrb[1].mxu0 }
 0x100   :  { %v309_v45 = vadd.f32 %v308_v44, %v112_v37 }
 0x101   :  { %v388_v46 = vmax.f32 %v314_v43, 0.0 }
 0x102   :  { %v387_v48 = vmax.f32 %v309_v45, 0.0  ;;  %v976_v49 = vpop.f32.mrb[2].mxu0 }
 0x103   :  { %v324_v51 = vadd.f32 %v976_v49, %v127_v38  ;;  %v318_v52 = vpop.f32.mrb[3].mxu0  ;;  %v182_v38 = vpop.permute.xlu0 %181  ;;  %v65_v49 = vld [vmem:[#allocation5 + $0xa0] sm:$0xff] }
 0x104   :  { %v319_v53 = vadd.f32 %v318_v52, %v122_v36  ;;  %v1107_v54 = vpack.c.bf16 %v388_v46, %v387_v48  ;;  %v62_v46 = vld [vmem:[#allocation5 + $0x88] sm:$0xff]  ;;  %v64_v48 = vld [vmem:[#allocation5 + $0x98] sm:$0xff] }
 0x105   :  { %v390_v55 = vmax.f32 %v324_v51, 0.0  ;;  %v67_v51 = vld [vmem:[#allocation5 + $0xb0] sm:$0xff]  ;;  %v68_v52 = vld [vmem:[#allocation5 + $0xb8] sm:$0xff] }
 0x106   :  { %v389_v56 = vmax.f32 %v319_v53, 0.0  ;;  %v979_v57 = vpop.f32.mrb[4].mxu0  ;;  %1108 = vmatprep.subr.bf16.mxu1 %v1107_v54  ;;  %v69_v53 = vld [vmem:[#allocation5 + $0xc0] sm:$0xff] }
 0x107   :  { %v334_v58 = vadd.f32 %v979_v57, %v137_v40  ;;  %v328_v59 = vpop.f32.mrb[5].mxu0  ;;  %1110 = vmatpush3.bf16.msra.mxu1 %v1107_v54  ;;  %v70_v54 = vld [vmem:[#allocation5 + $0xc8] sm:$0xff]  ;;  %v73_v57 = vld [vmem:[#allocation5 + $0xe0] sm:$0xff] }
 0x108   :  { %v1111_v61 = vpack.c.bf16 %v390_v55, %v389_v56  ;;  %v329_v62 = vadd.f32 %v328_v59, %v132_v41  ;;  %v71_v55 = vld [vmem:[#allocation5 + $0xd0] sm:$0xff]  ;;  %v72_v56 = vld [vmem:[#allocation5 + $0xd8] sm:$0xff] }
 0x109   :  { %v392_v1 = vmax.f32 %v334_v58, 0.0  ;;  %v74_v58 = vld [vmem:[#allocation5 + $0xe8] sm:$0xff]  ;;  %v75_v59 = vld [vmem:[#allocation5 + $0xf0] sm:$0xff] }
 0x10a   :  { %v391_v2 = vmax.f32 %v329_v62, 0.0  ;;  %v982_v3 = vpop.f32.mrb[6].mxu0  ;;  %1112 = vmatprep.subr.bf16.mxu1 %v1111_v61  ;;  %v1293_v62 = vmov 2  }
 0x10b   :  { %v344_v4 = vadd.f32 %v982_v3, %v147_v47  ;;  %v338_v5 = vpop.f32.mrb[7].mxu0  ;;  %1114 = vmatpush3.bf16.msra.mxu1 %v1111_v61  ;;  %v63_v47 = vld [vmem:[#allocation5 + $0x90] sm:$0xff]  ;;  %v77_v61 = vld [vmem:[#allocation5 + $0x100] sm:$0xff]  ;;  %1185 = vset.pattern.permute.xlu1 %v1293_v62 }
 0x10c   :  { %v1115_v6 = vpack.c.bf16 %v392_v1, %v391_v2  ;;  %v339_v8 = vadd.f32 %v338_v5, %v142_v50  ;;  %v66_v50 = vld [vmem:[#allocation5 + $0xa8] sm:$0xff]  ;;  %1083 = vmatprep.mubr.f32.mxu0 %v77_v61  ;;  %1186 = vset.pattern.permute.xlu0 %v1293_v62  ;;  %v409_v1 = vpop.permute.xlu1 %408 }
 0x10d   :  { %v394_v9 = vmax.f32 %v344_v4, 0.0  ;;  %629 = vperm.xlu1 %1185, %v1358_v7  }
 0x10e   :  { %v393_v11 = vmax.f32 %v339_v8, 0.0  ;;  %v985_v12 = vpop.f32.mrb[8].mxu0  ;;  %1116 = vmatprep.subr.bf16.mxu1 %v1115_v6 }
 0x10f   :  { %v354_v14 = vadd.f32 %v985_v12, %v157_v60  ;;  %v348_v15 = vpop.f32.mrb[9].mxu0  ;;  %1118 = vmatpush3.bf16.msra.mxu1 %v1115_v6  ;;  %v76_v60 = vld [vmem:[#allocation5 + $0xf8] sm:$0xff] }
 0x110   :  { %v1119_v16 = vpack.c.bf16 %v394_v9, %v393_v11  ;;  %v349_v17 = vadd.f32 %v348_v15, %v152_v63  ;;  %v405_v63 = vpop.permute.xlu0 %404  ;;  %v413_v3 = vpop.permute.xlu1 %412 }
 0x111   :  { %v396_v18 = vmax.f32 %v354_v14, 0.0 }
 0x112   :  { %v395_v19 = vmax.f32 %v349_v17, 0.0  ;;  %v988_v20 = vpop.f32.mrb[10].mxu0  ;;  %1120 = vmatprep.subr.bf16.mxu1 %v1119_v16 }
 0x113   :  { %v364_v21 = vadd.f32 %v988_v20, %v167_v10  ;;  %v358_v22 = vpop.f32.mrb[11].mxu0  ;;  %1122 = vmatpush3.bf16.msra.mxu1 %v1119_v16 }
 0x114   :  { %v1123_v24 = vpack.c.bf16 %v396_v18, %v395_v19  ;;  %v359_v25 = vadd.f32 %v358_v22, %v162_v13  ;;  %v417_v2 = vpop.permute.xlu0 %416  ;;  %v421_v5 = vpop.permute.xlu1 %420 }
 0x115   :  { %v398_v27 = vmax.f32 %v364_v21, 0.0 }
 0x116   :  { %v397_v28 = vmax.f32 %v359_v25, 0.0  ;;  %v991_v29 = vpop.f32.mrb[12].mxu0  ;;  %1124 = vmatprep.subr.bf16.mxu1 %v1123_v24 }
 0x117   :  { %v374_v30 = vadd.f32 %v991_v29, %v177_v23  ;;  %v368_v31 = vpop.f32.mrb[13].mxu0  ;;  %1126 = vmatpush3.bf16.msra.mxu1 %v1123_v24 }
 0x118   :  { %v1127_v32 = vpack.c.bf16 %v398_v27, %v397_v28  ;;  %v369_v33 = vadd.f32 %v368_v31, %v172_v26  ;;  %v425_v4 = vpop.permute.xlu0 %424  ;;  %v429_v15 = vpop.permute.xlu1 %428 }
 0x119   :  { %v400_v34 = vmax.f32 %v374_v30, 0.0 }
 0x11a   :  { %v399_v36 = vmax.f32 %v369_v33, 0.0  ;;  %v994_v37 = vpop.f32.mrb[14].mxu0  ;;  %1128 = vmatprep.subr.bf16.mxu1 %v1127_v32 }
 0x11b   :  { %v384_v39 = vadd.f32 %v994_v37, %v187_v35  ;;  %v378_v40 = vpop.f32.mrb[15].mxu0  ;;  %1130 = vmatpush3.bf16.msra.mxu1 %v1127_v32 }
 0x11c   :  { %v1131_v41 = vpack.c.bf16 %v400_v34, %v399_v36  ;;  %v379_v42 = vadd.f32 %v378_v40, %v182_v38  ;;  %v433_v12 = vpop.permute.xlu0 %432  ;;  %v437_v27 = vpop.permute.xlu1 %436 }
 0x11d   :  { %v402_v43 = vmax.f32 %v384_v39, 0.0 }
 0x11e   :  { %v401_v44 = vmax.f32 %v379_v42, 0.0  ;;  %1132 = vmatprep.subr.bf16.mxu1 %v1131_v41 }
 0x11f   :  { %1134 = vmatpush3.bf16.msra.mxu1 %v1131_v41 }
 0x120   :  { %v1135_v45 = vpack.c.bf16 %v402_v43, %v401_v44  ;;  %v441_v24 = vpop.permute.xlu0 %440  ;;  %v445_v39 = vpop.permute.xlu1 %444 }
 0x122   :  { %1136 = vmatprep.subr.bf16.mxu1 %v1135_v45 }
 0x123   :  { %1138 = vmatpush3.bf16.msra.mxu1 %v1135_v45 }
 0x124   :  { %v449_v36 = vpop.permute.xlu0 %448 }
 0x126   :  { %1028 = vmatmul.mubr.f32.vlgmr.msra.gmra.mrb[0].mxu1 %v62_v46 }
 0x127   :  { %1030 = vmatprep.mubr.f32.mxu1 %v63_v47 }
 0x12a   :  { %1031 = vmatmul.mubr.f32.gmra.mrb[2].mxu1 %v64_v48 }
 0x12b   :  { %1033 = vmatprep.mubr.f32.mxu1 %v65_v49  ;;  %v457_v49 = vpop.permute.xlu0 %456 }
 0x12e   :  { %1034 = vmatmul.mubr.f32.gmra.mrb[4].mxu1 %v66_v50 }
 0x12f   :  { %1036 = vmatprep.mubr.f32.mxu1 %v67_v51  ;;  %v465_v61 = vpop.permute.xlu0 %464 }
 0x132   :  { %1037 = vmatmul.mubr.f32.gmra.mrb[6].mxu1 %v68_v52  ;;  %v453_v52 = vpop.permute.xlu1 %452 }
 0x133   :  { %1039 = vmatprep.mubr.f32.mxu1 %v69_v53 }
 0x136   :  { %1040 = vmatmul.mubr.f32.gmra.mrb[8].mxu1 %v70_v54 }
 0x137   :  { %1042 = vmatprep.mubr.f32.mxu1 %v71_v55 }
 0x13a   :  { %1043 = vmatmul.mubr.f32.gmra.mrb[10].mxu1 %v72_v56 }
 0x13b   :  { %1045 = vmatprep.mubr.f32.mxu1 %v73_v57 }
 0x13e   :  { %1046 = vmatmul.mubr.f32.gmra.mrb[12].mxu1 %v74_v58 }
 0x13f   :  { %1048 = vmatprep.mubr.f32.mxu1 %v75_v59 }
 0x142   :  { %1049 = vmatmul.mubr.f32.gmra.mrb[14].mxu1 %v76_v60 }
 0x1f9   :  { %v1029_v6 = vpop.f32.mrb[0].mxu1 }
 0x1fa   :  { %v539_v8 = vadd.f32 %v1029_v6, %v409_v1  ;;  %v533_v9 = vpop.f32.mrb[1].mxu1  ;;  %v461_v1 = vpop.permute.xlu1 %460 }
 0x1fb   :  { %v534_v10 = vadd.f32 %v533_v9, %v405_v63 }
 0x1fc   :  { %v613_v11 = vmax.f32 %v539_v8, 0.0 }
 0x1fd   :  { %v612_v13 = vmax.f32 %v534_v10, 0.0  ;;  %v1032_v14 = vpop.f32.mrb[2].mxu1  ;;  %v78_v10 = vld [vmem:[#allocation5 + $0x108] sm:$0xff] }
 0x1fe   :  { %v549_v16 = vadd.f32 %v1032_v14, %v417_v2  ;;  %v543_v17 = vpop.f32.mrb[3].mxu1  ;;  %v82_v14 = vld [vmem:[#allocation5 + $0x128] sm:$0xff] }
 0x1ff   :  { %v1139_v18 = vpack.c.bf16 %v613_v11, %v612_v13  ;;  %v544_v19 = vadd.f32 %v543_v17, %v413_v3  ;;  %v79_v11 = vld [vmem:[#allocation5 + $0x110] sm:$0xff]  ;;  %v81_v13 = vld [vmem:[#allocation5 + $0x120] sm:$0xff] }
 0x200   :  { %v615_v7 = vmax.f32 %v549_v16, 0.0  ;;  %v84_v16 = vld [vmem:[#allocation5 + $0x138] sm:$0xff]  ;;  %v85_v17 = vld [vmem:[#allocation5 + $0x140] sm:$0xff] }
 0x201   :  { %v614_v20 = vmax.f32 %v544_v19, 0.0  ;;  %v1035_v21 = vpop.f32.mrb[4].mxu1  ;;  %1140 = vmatprep.subr.bf16.mxu0 %v1139_v18  ;;  %v87_v19 = vld [vmem:[#allocation5 + $0x150] sm:$0xff] }
 0x202   :  { %v559_v22 = vadd.f32 %v1035_v21, %v425_v4  ;;  %v553_v23 = vpop.f32.mrb[5].mxu1  ;;  %1142 = vmatpush3.bf16.msra.mxu0 %v1139_v18  ;;  %v86_v18 = vld [vmem:[#allocation5 + $0x148] sm:$0xff] }
 0x203   :  { %v1143_v25 = vpack.c.bf16 %v615_v7, %v614_v20  ;;  %v554_v26 = vadd.f32 %v553_v23, %v421_v5  ;;  %v88_v7 = vld [vmem:[#allocation5 + $0x158] sm:$0xff]  ;;  %v89_v20 = vld [vmem:[#allocation5 + $0x160] sm:$0xff]  ;;  %v90_v21 = vld [vmem:[#allocation5 + $0x168] sm:$0xff] }
 0x204   :  { %v617_v28 = vmax.f32 %v559_v22, 0.0  ;;  %v91_v22 = vld [vmem:[#allocation5 + $0x170] sm:$0xff]  ;;  %v92_v23 = vld [vmem:[#allocation5 + $0x178] sm:$0xff] }
 0x205   :  { %v616_v29 = vmax.f32 %v554_v26, 0.0  ;;  %v1038_v30 = vpop.f32.mrb[6].mxu1  ;;  %1144 = vmatprep.subr.bf16.mxu0 %v1143_v25 }
 0x206   :  { %v569_v31 = vadd.f32 %v1038_v30, %v433_v12  ;;  %v563_v32 = vpop.f32.mrb[7].mxu1  ;;  %1146 = vmatpush3.bf16.msra.mxu0 %v1143_v25  ;;  %v80_v12 = vld [vmem:[#allocation5 + $0x118] sm:$0xff] }
 0x207   :  { %v1147_v33 = vpack.c.bf16 %v617_v28, %v616_v29  ;;  %v564_v34 = vadd.f32 %v563_v32, %v429_v15  ;;  %v83_v15 = vld [vmem:[#allocation5 + $0x130] sm:$0xff] }
 0x208   :  { %v619_v35 = vmax.f32 %v569_v31, 0.0 }
 0x209   :  { %v618_v37 = vmax.f32 %v564_v34, 0.0  ;;  %v1041_v38 = vpop.f32.mrb[8].mxu1  ;;  %1148 = vmatprep.subr.bf16.mxu0 %v1147_v33 }
 0x20a   :  { %v579_v40 = vadd.f32 %v1041_v38, %v441_v24  ;;  %v573_v41 = vpop.f32.mrb[9].mxu1  ;;  %1150 = vmatpush3.bf16.msra.mxu0 %v1147_v33  ;;  %v630_v24 = vpop.permute.xlu1 %629 }
 0x20b   :  { %v1151_v42 = vpack.c.bf16 %v619_v35, %v618_v37  ;;  %v574_v43 = vadd.f32 %v573_v41, %v437_v27 }
 0x20c   :  { %v621_v44 = vmax.f32 %v579_v40, 0.0 }
 0x20d   :  { %v620_v45 = vmax.f32 %v574_v43, 0.0  ;;  %v1044_v46 = vpop.f32.mrb[10].mxu1  ;;  %1152 = vmatprep.subr.bf16.mxu0 %v1151_v42 }
 0x20e   :  { %v589_v47 = vadd.f32 %v1044_v46, %v449_v36  ;;  %v583_v48 = vpop.f32.mrb[11].mxu1  ;;  %1154 = vmatpush3.bf16.msra.mxu0 %v1151_v42 }
 0x20f   :  { %v1155_v50 = vpack.c.bf16 %v621_v44, %v620_v45  ;;  %v584_v51 = vadd.f32 %v583_v48, %v445_v39 }
 0x210   :  { %v623_v53 = vmax.f32 %v589_v47, 0.0 }
 0x211   :  { %v622_v54 = vmax.f32 %v584_v51, 0.0  ;;  %v1047_v55 = vpop.f32.mrb[12].mxu1  ;;  %1156 = vmatprep.subr.bf16.mxu0 %v1155_v50 }
 0x212   :  { %v599_v56 = vadd.f32 %v1047_v55, %v457_v49  ;;  %v593_v57 = vpop.f32.mrb[13].mxu1  ;;  %1158 = vmatpush3.bf16.msra.mxu0 %v1155_v50 }
 0x213   :  { %v1159_v58 = vpack.c.bf16 %v623_v53, %v622_v54  ;;  %v594_v59 = vadd.f32 %v593_v57, %v453_v52 }
 0x214   :  { %v625_v60 = vmax.f32 %v599_v56, 0.0 }
 0x215   :  { %v624_v62 = vmax.f32 %v594_v59, 0.0  ;;  %v1050_v63 = vpop.f32.mrb[14].mxu1  ;;  %1160 = vmatprep.subr.bf16.mxu0 %v1159_v58 }
 0x216   :  { %v609_v2 = vadd.f32 %v1050_v63, %v465_v61  ;;  %v603_v3 = vpop.f32.mrb[15].mxu1  ;;  %1162 = vmatpush3.bf16.msra.mxu0 %v1159_v58 }
 0x217   :  { %v1163_v4 = vpack.c.bf16 %v625_v60, %v624_v62  ;;  %v604_v5 = vadd.f32 %v603_v3, %v461_v1 }
 0x218   :  { %v627_v6 = vmax.f32 %v609_v2, 0.0 }
 0x219   :  { %v626_v8 = vmax.f32 %v604_v5, 0.0  ;;  %1164 = vmatprep.subr.bf16.mxu0 %v1163_v4 }
 0x21a   :  { %1166 = vmatpush3.bf16.msra.mxu0 %v1163_v4 }
 0x21b   :  { %v1167_v9 = vpack.c.bf16 %v627_v6, %v626_v8 }
 0x21d   :  { %1168 = vmatprep.subr.bf16.mxu0 %v1167_v9 }
 0x21e   :  { %1170 = vmatpush3.bf16.msra.mxu0 %v1167_v9 }
 0x221   :  { %1084 = vmatmul.mubr.f32.vlgmr.msra.gmra.mrb[16].mxu0 %v78_v10 }
 0x222   :  { %1086 = vmatprep.mubr.f32.mxu0 %v79_v11 }
 0x225   :  { %1087 = vmatmul.mubr.f32.gmra.mrb[18].mxu0 %v80_v12 }
 0x226   :  { %1089 = vmatprep.mubr.f32.mxu0 %v81_v13 }
 0x229   :  { %1090 = vmatmul.mubr.f32.gmra.mrb[20].mxu0 %v82_v14 }
 0x22a   :  { %1092 = vmatprep.mubr.f32.mxu0 %v83_v15 }
 0x22d   :  { %1093 = vmatmul.mubr.f32.gmra.mrb[22].mxu0 %v84_v16 }
 0x22e   :  { %1095 = vmatprep.mubr.f32.mxu0 %v85_v17 }
 0x231   :  { %1096 = vmatmul.mubr.f32.gmra.mrb[24].mxu0 %v86_v18 }
 0x232   :  { %1098 = vmatprep.mubr.f32.mxu0 %v87_v19 }
 0x235   :  { %1099 = vmatmul.mubr.f32.gmra.mrb[26].mxu0 %v88_v7 }
 0x236   :  { %1101 = vmatprep.mubr.f32.mxu0 %v89_v20 }
 0x239   :  { %1102 = vmatmul.mubr.f32.gmra.mrb[28].mxu0 %v90_v21 }
 0x23a   :  { %1104 = vmatprep.mubr.f32.mxu0 %v91_v22 }
 0x23d   :  { %1105 = vmatmul.mubr.f32.gmra.mrb[30].mxu0 %v92_v23 }
 0x2f4   :  { %v1085_v25 = vpop.f32.mrb[16].mxu0 }
 0x2f5   :  { %v743_v26 = vpop.f32.mrb[17].mxu0 }
 0x2f6   :  { %v744_v27 = vadd.f32 %v743_v26, %v630_v24 }
 0x2f8   :  { %v809_v28 = vrot.slane %v744_v27, 7  ;;  %v1088_v29 = vpop.f32.mrb[18].mxu0  ;;  %840 = vst.msk [vmem:[#allocation8] sm:$0x3] %vm839_vm2, %v744_v27 }
 0x2f9   :  { %v752_v30 = vpop.f32.mrb[19].mxu0 }
 0x2fa   :  { %1246 = shalt.err (!%p1243_p6)
}
 0x2fb   :  { %s1247_s18 = scalar_lea.hbm %s1408_s4, 32 }
 0x2fc   :  { %p1248_p7 = scmp.ne.s32.totalorder %s1408_s4, %s1247_s18  ;;  %p1251_p8 = scmp.lt.u32.totalorder %s1247_s18, %s1408_s4 }
 0x2fe   :  { %p1253_p9 = pnand %p1251_p8, %p1248_p7 }
 0x300   :  { %1256 = shalt.err (!%p1253_p9)
}
 0x301   :  { %860 = dma.vmem_to_hbm [thread:$0]  %s858_s14, 32, %s1408_s4, [#allocation9]   ;;  %v811_v31 = vsub.f32 %v744_v27, %v809_v28  ;;  %v1091_v33 = vpop.f32.mrb[20].mxu0  ;;  %v1295_v45 = vmov 1966171168   ;;  %v822_v47 = vlaneseq  ;;  %vm837_vm3 = vcmask 57344  }
 0x302   :  { %v760_v34 = vpop.f32.mrb[21].mxu0  ;;  %v820_v46 = vunpack.c.l.s4 %v1295_v45  ;;  %v807_v57 = vld [vmem:[%s1405_s1] sm:$0x1]  ;;  %s1296_s26 = smov [#allocation7]  }
 0x303   :  { %v812_v32 = vsub.f32 0.0, %v811_v31  ;;  %v1094_v36 = vpop.f32.mrb[22].mxu0  ;;  %v823_v51 = vshrl.u32 %v822_v47, 7  ;;  %s847_s27 = sshll.u32 %s1296_s26, 4  ;;  %s848_s27 = int_to_ptr.vmem [resolvable:$true] %s847_s27 }
 0x304   :  { %v768_v37 = vpop.f32.mrb[23].mxu0  ;;  %v821_v50 = vunpack.c.0.s8 %v820_v46  ;;  %s1257_s28 = scalar_lea.vmem %s848_s27, 16  ;;  %s1261_s29 = scalar_lea.vmem %s848_s27, 32 }
 0x305   :  { %v813_v35 = vmul.f32 1.442695, %v812_v32  ;;  %v1097_v38 = vpop.f32.mrb[24].mxu0  ;;  %p1258_p10 = scmp.ne.s32.totalorder %s848_s27, %s1257_s28  ;;  %p1262_p11 = scmp.lt.s32.totalorder %s848_s27, %s848_s27 }
 0x306   :  { %v776_v39 = vpop.f32.mrb[25].mxu0  ;;  %v824_v53 = vsub.s32 %v821_v50, %v823_v51  ;;  %p1263_p12 = scmp.lt.s32.totalorder %s1261_s29, %s1257_s28 }
 0x307   :  { %1187 = vpow2.f32 %v813_v35 }
 0x308   :  { %v1100_v40 = vpop.f32.mrb[26].mxu0  ;;  %p1264_p13 = por %p1263_p12, %p1262_p11 }
 0x309   :  { %v784_v41 = vpop.f32.mrb[27].mxu0 }
 0x30a   :  { %p1265_p0 = pnand %p1264_p13, %p1258_p10 }
 0x30c   :  { %v1103_v44 = vpop.f32.mrb[28].mxu0 }
 0x30d   :  { %v792_v48 = vpop.f32.mrb[29].mxu0 }
 0x310   :  { %v1106_v49 = vpop.f32.mrb[30].mxu0 }
 0x311   :  { %v1188_v42 = vpop.eup %1187  ;;  %v800_v52 = vpop.f32.mrb[31].mxu0 }
 0x312   :  { %v815_v43 = vadd.f32 1.0, %v1188_v42 }
 0x314   :  { %1189 = vrcp.f32 %v815_v43 }
 0x31e   :  { %v1190_v54 = vpop.eup %1189 }
 0x31f   :  { %v825_v55 = vrot.slane %v1190_v54, %v824_v53 }
 0x321   :  { %v826_v56 = vcombine.high %v825_v55, %v825_v55 }
 0x323   :  { %v833_v58 = vrot.slane %v826_v56, %v824_v53 }
 0x325   :  { %vm835_vm4 = vcmp.lt.f32.partialorder %v807_v57, %v833_v58 }
 0x326   :  { %v836_v59 = vsel %vm835_vm4, 1, %v1291_v0 }
 0x327   :  { %838 = vst.msk [vmem:[#allocation7] sm:$0x1] %vm837_vm3, %v836_v59 }
 0x328   :  { %1268 = shalt.err (!%p1265_p0)
}
 0x329   :  { %s1269_s1 = scalar_lea.hbm %s1407_s3, 16 }
 0x32a   :  { %p1270_p1 = scmp.ne.s32.totalorder %s1407_s3, %s1269_s1  ;;  %p1273_p2 = scmp.lt.u32.totalorder %s1269_s1, %s1407_s3 }
 0x32c   :  { %p1275_p3 = pnand %p1273_p2, %p1270_p1 }
 0x32e   :  { %1278 = shalt.err (!%p1275_p3)
}
 0x32f   :  { %850 = dma.vmem_to_hbm [thread:$0]  %s848_s27, 16, %s1407_s3, [#allocation4]  }
 0x330   :  { %1283 = dma.done.wait [#allocation4], 16  }
 0x331   :  { %1284 = vsyncadd [#allocation4], 4294967280 }
 0x332   :  { %1285 = dma.done.wait [#allocation9], 32  }
 0x333   :  { %1286 = vsyncadd [#allocation9], 4294967264 }
 0x334   :  { %867 = vsyncpa [#allocation3], 1 }
 0x335   :  { %868 = vsyncpa [#allocation6], 1 }
 0x336   :  { %869 = vsyncpa [#allocation4], 1 }
 0x337   :  { %870 = vsyncpa [#allocation9], 1 }

</bundles_post_ra>
